<compile_context>
chip_gen: v7x
topology: tpu7x:2x2x1
jax: 0.10.0
libtpu: 0.0.40
codegen_flags: <defaults>
</compile_context>

<pallas_src>
import functools

import jax
import jax.numpy as jnp
from jax.experimental import pallas as pl
from jax.experimental.pallas import tpu as pltpu

_LANE = 128  # TPU vreg lane width


def _round_up(x, m):
    return (x + m - 1) // m * m


def _default_tile_b(batch):
    """Batch-tile heuristic.

    Big enough to amortize the ~0.35us per-grid-step overhead, capped at 512
    rows, and chosen so batches > 16 produce >= 2 grid steps (v7x shards the
    'parallel' grid axis across its two TensorCores).  Small batches use a
    single full-array block (block dim == array dim is always layout-legal).
    """
    if batch <= 16:
        return batch
    return min(512, _round_up((batch + 1) // 2, 16))


def _esg_head_kernel(x_ref,
                     w1_ref, b1_ref,
                     w2_ref, b2_ref,
                     wo_ref, bo_ref,
                     logits_ref, sig_ref):
    """Fused MLP head: (Linear+ReLU) x2 -> Linear -> Sigmoid.

    MXU matmuls take bf16 inputs with f32 accumulation; bias/ReLU stay f32.
    Dropout is identity in inference mode.  All ops are row-independent, so
    garbage rows in a partial last batch block cannot contaminate valid rows.
    """
    x = x_ref[...].astype(jnp.bfloat16)  # cast in VMEM (no extra HBM pass)

    # fc_layer1: Linear + ReLU (+ Dropout == identity in eval)
    h = jnp.dot(x, w1_ref[...], preferred_element_type=jnp.float32) + b1_ref[...]
    h = jnp.maximum(h, 0.0)

    # fc_layer2: Linear + ReLU (+ Dropout == identity in eval)
    h = jnp.dot(h.astype(jnp.bfloat16), w2_ref[...],
                preferred_element_type=jnp.float32) + b2_ref[...]
    h = jnp.maximum(h, 0.0)

    # output_layer: Linear
    logits = jnp.dot(h.astype(jnp.bfloat16), wo_ref[...],
                     preferred_element_type=jnp.float32) + bo_ref[...]

    logits_ref[...] = logits
    # sigmoid: exp on the EUP, approximate reciprocal also on the EUP.
    sig_ref[...] = pl.reciprocal(1.0 + jnp.exp(-logits),
                                 approx=True).astype(sig_ref.dtype)


def prepare_esg_head_params(w1, b1, w2, b2, wo, bo):
    """One-time (model-load) weight preparation.

    Pads every *output* feature dim to a multiple of 128 lanes and casts
    weights to bf16 / biases to f32.  The weight *input* dims are kept at the
    logical sizes so the raw pooled tensor can be fed to the kernel unpadded.
    Returns (params_tuple, num_labels).
    """
    H, d1 = w1.shape
    d2 = w2.shape[1]
    num_labels = wo.shape[1]
    D1p = _round_up(d1, _LANE)
    D2p = _round_up(d2, _LANE)
    Lp = _round_up(num_labels, _LANE)

    def pad2(a, rows, cols):
        return jnp.pad(a, ((0, rows - a.shape[0]), (0, cols - a.shape[1])))

    params = (
        pad2(w1, H, D1p).astype(jnp.bfloat16),
        pad2(b1, 1, D1p).astype(jnp.float32),
        pad2(w2, D1p, D2p).astype(jnp.bfloat16),
        pad2(b2, 1, D2p).astype(jnp.float32),
        pad2(wo, D2p, Lp).astype(jnp.bfloat16),
        pad2(bo, 1, Lp).astype(jnp.float32),
    )
    return params, num_labels


@functools.partial(jax.jit, static_argnames=("num_labels",))
def esg_classifier_head(pooled, params, *, num_labels):
    """Pallas wrapper.

    pooled: [B, H] pooled hidden state (float32/bfloat16, unpadded).
    params: output of prepare_esg_head_params (padded bf16 weights, f32 biases).
    Returns (logits [B, num_labels] f32, sigmoids [B, num_labels] bf16).
    """
    w1, b1, w2, b2, wo, bo = params
    B, H = pooled.shape
    D1p = w1.shape[1]
    D2p = w2.shape[1]
    Lp = wo.shape[1]

    tile_b = _default_tile_b(B)
    grid = (pl.cdiv(B, tile_b),)  # ragged batch -> partial last block

    # Batch-tiled activations/outputs; weights/biases constant across the grid
    # (single DMA, VMEM-resident for every step).
    act_spec = lambda cols: pl.BlockSpec((tile_b, cols), lambda i: (i, 0))
    const_spec = lambda shape: pl.BlockSpec(shape, lambda i: (0, 0))

    out_shapes = (
        jax.ShapeDtypeStruct((B, Lp), jnp.float32),   # logits (lane-padded)
        jax.ShapeDtypeStruct((B, Lp), jnp.bfloat16),  # sigmoids (lane-padded)
    )

    itemsize = lambda a: int(jnp.dtype(a.dtype).itemsize)
    cost = pl.CostEstimate(
        flops=int(2 * B * (H * D1p + D1p * D2p + D2p * Lp)),
        transcendentals=int(B * Lp),
        bytes_accessed=int(
            B * H * itemsize(pooled)
            + sum(a.size * itemsize(a) for a in params)
            + B * Lp * (4 + 2)),
    )

    logits_p, sig_p = pl.pallas_call(
        _esg_head_kernel,
        out_shape=out_shapes,
        grid=grid,
        in_specs=[
            act_spec(H),
            const_spec(w1.shape), const_spec(b1.shape),
            const_spec(w2.shape), const_spec(b2.shape),
            const_spec(wo.shape), const_spec(bo.shape),
        ],
        out_specs=(act_spec(Lp), act_spec(Lp)),
        compiler_params=pltpu.CompilerParams(
            dimension_semantics=("parallel",)),
        cost_estimate=cost,
    )(pooled, w1, b1, w2, b2, wo, bo)

    # Slice the lane padding back off (no batch padding to remove).
    return logits_p[:, :num_labels], sig_p[:, :num_labels]


def _init_linear(key, fan_in, fan_out):
    """Deterministic nn.Linear-style init: U(-1/sqrt(fan_in), 1/sqrt(fan_in)).

    Returns weight as [in, out] (transposed vs. PyTorch) and bias as [1, out].
    """
    kw, kb = jax.random.split(key)
    bound = 1.0 / (fan_in ** 0.5)
    w = jax.random.uniform(kw, (fan_in, fan_out), jnp.float32, -bound, bound)
    b = jax.random.uniform(kb, (1, fan_out), jnp.float32, -bound, bound)
    return w, b


if __name__ == "__main__":
    # Small, module-consistent config:
    #   pooled hidden size = 64   (stand-in for BERT's 768)
    #   layer_dict = { layer1: 64->48 (ReLU), layer2: 48->32 (ReLU) }
    #   num_labels = 8
    batch = 4
    hidden = 64
    l1_out = 48
    l2_out = 32
    num_labels = 8

    root = jax.random.PRNGKey(0)
    k_x, k_1, k_2, k_o = jax.random.split(root, 4)

    # Synthetic pooled output of the (not-implemented) pretrained backbone.
    pooled = jax.random.normal(k_x, (batch, hidden), jnp.float32)

    w1, b1 = _init_linear(k_1, hidden, l1_out)
    w2, b2 = _init_linear(k_2, l1_out, l2_out)
    wo, bo = _init_linear(k_o, l2_out, num_labels)

    # One-time weight preparation (model load), outside the per-call path.
    params, n_labels = prepare_esg_head_params(w1, b1, w2, b2, wo, bo)
    params = jax.block_until_ready(params)

    logits, sigmoids = esg_classifier_head(pooled, params, num_labels=n_labels)
    jax.block_until_ready((logits, sigmoids))

    # Pure-JAX reference with matching precision (bf16 MXU inputs, f32 acc).
    xb = pooled.astype(jnp.bfloat16)
    w1b, w2b, wob = (w.astype(jnp.bfloat16) for w in (w1, w2, wo))
    h = jnp.maximum(jnp.dot(xb, w1b, preferred_element_type=jnp.float32) + b1, 0.0)
    h = jnp.maximum(jnp.dot(h.astype(jnp.bfloat16), w2b,
                            preferred_element_type=jnp.float32) + b2, 0.0)
    ref_logits = jnp.dot(h.astype(jnp.bfloat16), wob,
                         preferred_element_type=jnp.float32) + bo
    ref_sig = jax.nn.sigmoid(ref_logits)

    assert logits.shape == (batch, num_labels)
    assert sigmoids.shape == (batch, num_labels)
    assert logits.dtype == jnp.float32
    assert sigmoids.dtype == jnp.bfloat16
    # Tolerances cover MXU summation-order differences, the EUP approximate
    # reciprocal in the in-kernel sigmoid, and the bf16 sigmoid output dtype.
    assert jnp.allclose(logits, ref_logits, atol=2e-2, rtol=2e-2)
    assert jnp.allclose(sigmoids.astype(jnp.float32), ref_sig,
                        atol=2e-2, rtol=2e-2)

    print("KERNEL_OK")
</pallas_src>

<mosaic_0001>
module attributes {stable_mosaic.version = 11 : i64} {
  func.func @_esg_head_kernel(%arg0: i32, %arg1: memref<4x64xf32, #tpu.memory_space<vmem>>, %arg2: memref<64x128xbf16, #tpu.memory_space<vmem>>, %arg3: memref<1x128xf32, #tpu.memory_space<vmem>>, %arg4: memref<128x128xbf16, #tpu.memory_space<vmem>>, %arg5: memref<1x128xf32, #tpu.memory_space<vmem>>, %arg6: memref<128x128xbf16, #tpu.memory_space<vmem>>, %arg7: memref<1x128xf32, #tpu.memory_space<vmem>>, %arg8: memref<4x128xf32, #tpu.memory_space<vmem>>, %arg9: memref<4x128xbf16, #tpu.memory_space<vmem>>) attributes {dimension_semantics = [#tpu.dimension_semantics<parallel>], iteration_bounds = array<i64: 1>, scalar_prefetch = 0 : i64, scratch_operands = 0 : i64, tpu.core_type = #tpu.core_type<tc>, window_params = [{transform_indices = @transform_0, window_bounds = array<i64: 4, 64>}, {pipeline_mode = #tpu.pipeline_mode<synchronous>, transform_indices = @transform_1, window_bounds = array<i64: 64, 128>}, {pipeline_mode = #tpu.pipeline_mode<synchronous>, transform_indices = @transform_2, window_bounds = array<i64: 1, 128>}, {pipeline_mode = #tpu.pipeline_mode<synchronous>, transform_indices = @transform_3, window_bounds = array<i64: 128, 128>}, {pipeline_mode = #tpu.pipeline_mode<synchronous>, transform_indices = @transform_4, window_bounds = array<i64: 1, 128>}, {pipeline_mode = #tpu.pipeline_mode<synchronous>, transform_indices = @transform_5, window_bounds = array<i64: 128, 128>}, {pipeline_mode = #tpu.pipeline_mode<synchronous>, transform_indices = @transform_6, window_bounds = array<i64: 1, 128>}, {transform_indices = @transform_7, window_bounds = array<i64: 4, 128>}, {transform_indices = @transform_8, window_bounds = array<i64: 4, 128>}]} {
    %c0 = arith.constant 0 : index
    %c0_0 = arith.constant 0 : index
    %0 = vector.load %arg1[%c0, %c0_0] : memref<4x64xf32, #tpu.memory_space<vmem>>, vector<4x64xf32>
    %1 = arith.truncf %0 : vector<4x64xf32> to vector<4x64xbf16>
    %c0_1 = arith.constant 0 : index
    %c0_2 = arith.constant 0 : index
    %2 = vector.load %arg2[%c0_1, %c0_2] : memref<64x128xbf16, #tpu.memory_space<vmem>>, vector<64x128xbf16>
    %cst = arith.constant dense<0.000000e+00> : vector<4x128xf32>
    %3 = tpu.matmul %1, %2, %cst {dimension_numbers = #tpu.dot_dimension_numbers<[1], [0], [0], [1], [0, 0, 1, 1], [], []>} : vector<4x64xbf16>, vector<64x128xbf16>, vector<4x128xf32> -> vector<4x128xf32>
    %c0_3 = arith.constant 0 : index
    %c0_4 = arith.constant 0 : index
    %4 = vector.load %arg3[%c0_3, %c0_4] : memref<1x128xf32, #tpu.memory_space<vmem>>, vector<1x128xf32>
    %5 = vector.broadcast %4 : vector<1x128xf32> to vector<4x128xf32>
    %6 = arith.addf %3, %5 : vector<4x128xf32>
    %cst_5 = arith.constant 0.000000e+00 : f32
    %7 = vector.broadcast %cst_5 : f32 to vector<4x128xf32>
    %8 = arith.maximumf %6, %7 : vector<4x128xf32>
    %9 = arith.truncf %8 : vector<4x128xf32> to vector<4x128xbf16>
    %c0_6 = arith.constant 0 : index
    %c0_7 = arith.constant 0 : index
    %10 = vector.load %arg4[%c0_6, %c0_7] : memref<128x128xbf16, #tpu.memory_space<vmem>>, vector<128x128xbf16>
    %cst_8 = arith.constant dense<0.000000e+00> : vector<4x128xf32>
    %11 = tpu.matmul %9, %10, %cst_8 {dimension_numbers = #tpu.dot_dimension_numbers<[1], [0], [0], [1], [0, 0, 1, 1], [], []>} : vector<4x128xbf16>, vector<128x128xbf16>, vector<4x128xf32> -> vector<4x128xf32>
    %c0_9 = arith.constant 0 : index
    %c0_10 = arith.constant 0 : index
    %12 = vector.load %arg5[%c0_9, %c0_10] : memref<1x128xf32, #tpu.memory_space<vmem>>, vector<1x128xf32>
    %13 = vector.broadcast %12 : vector<1x128xf32> to vector<4x128xf32>
    %14 = arith.addf %11, %13 : vector<4x128xf32>
    %cst_11 = arith.constant 0.000000e+00 : f32
    %15 = vector.broadcast %cst_11 : f32 to vector<4x128xf32>
    %16 = arith.maximumf %14, %15 : vector<4x128xf32>
    %17 = arith.truncf %16 : vector<4x128xf32> to vector<4x128xbf16>
    %c0_12 = arith.constant 0 : index
    %c0_13 = arith.constant 0 : index
    %18 = vector.load %arg6[%c0_12, %c0_13] : memref<128x128xbf16, #tpu.memory_space<vmem>>, vector<128x128xbf16>
    %cst_14 = arith.constant dense<0.000000e+00> : vector<4x128xf32>
    %19 = tpu.matmul %17, %18, %cst_14 {dimension_numbers = #tpu.dot_dimension_numbers<[1], [0], [0], [1], [0, 0, 1, 1], [], []>} : vector<4x128xbf16>, vector<128x128xbf16>, vector<4x128xf32> -> vector<4x128xf32>
    %c0_15 = arith.constant 0 : index
    %c0_16 = arith.constant 0 : index
    %20 = vector.load %arg7[%c0_15, %c0_16] : memref<1x128xf32, #tpu.memory_space<vmem>>, vector<1x128xf32>
    %21 = vector.broadcast %20 : vector<1x128xf32> to vector<4x128xf32>
    %22 = arith.addf %19, %21 : vector<4x128xf32>
    %c0_17 = arith.constant 0 : index
    %c0_18 = arith.constant 0 : index
    %23 = vector.load %arg8[%c0_17, %c0_18] : memref<4x128xf32, #tpu.memory_space<vmem>>, vector<4x128xf32>
    tpu.vector_store %arg8[%c0_17, %c0_18], %22 {strides = array<i32>} : memref<4x128xf32, #tpu.memory_space<vmem>>, vector<4x128xf32>,
    %cst_19 = arith.constant 0.000000e+00 : f32
    %24 = vector.broadcast %cst_19 : f32 to vector<4x128xf32>
    %25 = arith.subf %24, %22 : vector<4x128xf32>
    %26 = math.exp %25 : vector<4x128xf32>
    %cst_20 = arith.constant 1.000000e+00 : f32
    %27 = vector.broadcast %cst_20 : f32 to vector<4x128xf32>
    %28 = arith.addf %27, %26 : vector<4x128xf32>
    %29 = tpu.reciprocal %28 {approx = true} : vector<4x128xf32> -> vector<4x128xf32>
    %30 = arith.truncf %29 : vector<4x128xf32> to vector<4x128xbf16>
    %c0_21 = arith.constant 0 : index
    %c0_22 = arith.constant 0 : index
    %31 = vector.load %arg9[%c0_21, %c0_22] : memref<4x128xbf16, #tpu.memory_space<vmem>>, vector<4x128xbf16>
    tpu.vector_store %arg9[%c0_21, %c0_22], %30 {strides = array<i32>} : memref<4x128xbf16, #tpu.memory_space<vmem>>, vector<4x128xbf16>,
    return
  }
  func.func @transform_0(%arg0: i32) -> (i32, i32) {
    %c0_i32 = arith.constant 0 : i32
    %c0_i32_0 = arith.constant 0 : i32
    return %arg0, %c0_i32 : i32, i32
  }
  func.func @transform_1(%arg0: i32) -> (i32, i32) {
    %c0_i32 = arith.constant 0 : i32
    %c0_i32_0 = arith.constant 0 : i32
    %c0_i32_1 = arith.constant 0 : i32
    return %c0_i32, %c0_i32_0 : i32, i32
  }
  func.func @transform_2(%arg0: i32) -> (i32, i32) {
    %c0_i32 = arith.constant 0 : i32
    %c0_i32_0 = arith.constant 0 : i32
    %c0_i32_1 = arith.constant 0 : i32
    return %c0_i32, %c0_i32_0 : i32, i32
  }
  func.func @transform_3(%arg0: i32) -> (i32, i32) {
    %c0_i32 = arith.constant 0 : i32
    %c0_i32_0 = arith.constant 0 : i32
    %c0_i32_1 = arith.constant 0 : i32
    return %c0_i32, %c0_i32_0 : i32, i32
  }
  func.func @transform_4(%arg0: i32) -> (i32, i32) {
    %c0_i32 = arith.constant 0 : i32
    %c0_i32_0 = arith.constant 0 : i32
    %c0_i32_1 = arith.constant 0 : i32
    return %c0_i32, %c0_i32_0 : i32, i32
  }
  func.func @transform_5(%arg0: i32) -> (i32, i32) {
    %c0_i32 = arith.constant 0 : i32
    %c0_i32_0 = arith.constant 0 : i32
    %c0_i32_1 = arith.constant 0 : i32
    return %c0_i32, %c0_i32_0 : i32, i32
  }
  func.func @transform_6(%arg0: i32) -> (i32, i32) {
    %c0_i32 = arith.constant 0 : i32
    %c0_i32_0 = arith.constant 0 : i32
    %c0_i32_1 = arith.constant 0 : i32
    return %c0_i32, %c0_i32_0 : i32, i32
  }
  func.func @transform_7(%arg0: i32) -> (i32, i32) {
    %c0_i32 = arith.constant 0 : i32
    %c0_i32_0 = arith.constant 0 : i32
    return %arg0, %c0_i32 : i32, i32
  }
  func.func @transform_8(%arg0: i32) -> (i32, i32) {
    %c0_i32 = arith.constant 0 : i32
    %c0_i32_0 = arith.constant 0 : i32
    return %arg0, %c0_i32 : i32, i32
  }
}

</mosaic_0001>

<bundles_post_ra>
// kernel: esg_classifier_head.1
= control target key start
LH: loop header
LB: loop body
LE: loop exit
PB: predicated region body
PF: predicated region fallthrough
CT: control target
= control target key end

     0   :  { %14 = vsyncpa [#allocation3], 0  ;;  %s880_s0 = inlined_call_operand.hbm [shape: f32[4,64], index: 0, kind: input, shape index: {}]   ;;  %s881_s1 = inlined_call_operand.hbm [shape: bf16[64,128], index: 1, kind: input, shape index: {}]   ;;  %s882_s2 = inlined_call_operand.vmem [shape: f32[1,128], index: 2, kind: input, shape index: {}]   ;;  %s883_s3 = inlined_call_operand.hbm [shape: bf16[128,128], index: 3, kind: input, shape index: {}]   ;;  %s884_s4 = inlined_call_operand.vmem [shape: f32[1,128], index: 4, kind: input, shape index: {}]   ;;  %s885_s5 = inlined_call_operand.hbm [shape: bf16[128,128], index: 5, kind: input, shape index: {}]   ;;  %s886_s6 = inlined_call_operand.vmem [shape: f32[1,128], index: 6, kind: input, shape index: {}]   ;;  %s887_s7 = inlined_call_operand.hbm [shape: f32[4,128], index: 7, kind: output, shape index: {0}]   ;;  %s888_s8 = inlined_call_operand.hbm [shape: bf16[4,128], index: 8, kind: output, shape index: {1}]  }
   0x1   :  { %15 = vsyncpa [#allocation6], 0 }
   0x2   :  { %16 = vsyncpa [#allocation9], 0 }
   0x3   :  { %17 = vsyncpa [#allocation4], 0 }
   0x4   :  { %18 = vsyncpa [#allocation12], 0  ;;  %s709_s27 = smov [#allocation5]   ;;  %s567_s9 = scalar_lea.hbm %s881_s1, 512 }
   0x5   :  { %s34_s28 = sshll.u32 %s709_s27, 4  ;;  %p568_p0 = scmp.ne.s32.totalorder %s881_s1, %s567_s9  ;;  %s35_s28 = int_to_ptr.vmem [resolvable:$true] %s34_s28 }
   0x6   :  { %p571_p1 = scmp.lt.u32.totalorder %s567_s9, %s881_s1 }
   0x8   :  { %p573_p2 = pnand %p571_p1, %p568_p0 }
   0xa   :  { %576 = shalt.err (!%p573_p2)
}
   0xb   :  { %s577_s14 = scalar_lea.vmem %s35_s28, 512  ;;  %p582_p4 = scmp.lt.s32.totalorder %s35_s28, %s35_s28 }
   0xc   :  { %p578_p3 = scmp.ne.s32.totalorder %s35_s28, %s577_s14  ;;  %p583_p5 = scmp.lt.s32.totalorder %s577_s14, %s577_s14 }
   0xe   :  { %p584_p6 = por %p583_p5, %p582_p4 }
  0x10   :  { %p585_p7 = pnand %p584_p6, %p578_p3 }
  0x12   :  { %588 = shalt.err (!%p585_p7)
}
  0x13   :  { %s710_s15 = smov 64   ;;  %s711_s16 = smov 4  }
  0x14   :  { %40 = dma.hbm_to_vmem [thread:$0]  %s881_s1, 512, %s35_s28, [#allocation6], %s710_s15, %s710_s15, %s711_s16  }
  0x15   :  { %s712_s19 = smov [#allocation2]   ;;  %s713_s21 = smov [#allocation7]  }
  0x16   :  { %s25_s20 = sshll.u32 %s712_s19, 4  ;;  %s48_s22 = sshll.u32 %s713_s21, 4  ;;  %s26_s20 = int_to_ptr.vmem [resolvable:$true] %s25_s20  ;;  %s49_s22 = int_to_ptr.vmem [resolvable:$true] %s48_s22 }
  0x17   :  { %s589_s25 = scalar_lea.hbm %s880_s0, 64 }
  0x18   :  { %p590_p8 = scmp.ne.s32.totalorder %s880_s0, %s589_s25  ;;  %p593_p9 = scmp.lt.u32.totalorder %s589_s25, %s880_s0 }
  0x1a   :  { %p595_p10 = pnand %p593_p9, %p590_p8 }
  0x1c   :  { %598 = shalt.err (!%p595_p10)
}
  0x1d   :  { %s599_s1 = scalar_lea.vmem %s26_s20, 64  ;;  %p604_p12 = scmp.lt.s32.totalorder %s26_s20, %s26_s20 }
  0x1e   :  { %p600_p11 = scmp.ne.s32.totalorder %s26_s20, %s599_s1  ;;  %p605_p13 = scmp.lt.s32.totalorder %s599_s1, %s599_s1 }
  0x20   :  { %p606_p0 = por %p605_p13, %p604_p12 }
  0x22   :  { %p607_p1 = pnand %p606_p0, %p600_p11 }
  0x24   :  { %610 = shalt.err (!%p607_p1)
}
  0x25   :  { %28 = dma.hbm_to_vmem [thread:$0]  %s880_s0, 64, %s26_s20, [#allocation3]  }
  0x26   :  { %s611_s12 = scalar_lea.hbm %s883_s3, 1024 }
  0x27   :  { %p612_p2 = scmp.ne.s32.totalorder %s883_s3, %s611_s12  ;;  %p615_p3 = scmp.lt.u32.totalorder %s611_s12, %s883_s3 }
  0x29   :  { %p617_p4 = pnand %p615_p3, %p612_p2 }
  0x2b   :  { %620 = shalt.err (!%p617_p4)
}
  0x2c   :  { %s621_s19 = scalar_lea.vmem %s49_s22, 1024  ;;  %p626_p6 = scmp.lt.s32.totalorder %s49_s22, %s49_s22 }
  0x2d   :  { %p622_p5 = scmp.ne.s32.totalorder %s49_s22, %s621_s19  ;;  %p627_p7 = scmp.lt.s32.totalorder %s621_s19, %s621_s19 }
  0x2f   :  { %p628_p8 = por %p627_p7, %p626_p6 }
  0x31   :  { %p629_p9 = pnand %p628_p8, %p622_p5 }
  0x33   :  { %632 = shalt.err (!%p629_p9)
}
  0x34   :  { %54 = dma.hbm_to_vmem [thread:$0]  %s883_s3, 1024, %s49_s22, [#allocation6], %s710_s15, %s710_s15, %s711_s16  }
  0x35   :  { %s714_s21 = smov [#allocation8]   ;;  %s633_s26 = scalar_lea.hbm %s885_s5, 1024 }
  0x36   :  { %s62_s23 = sshll.u32 %s714_s21, 4  ;;  %p634_p10 = scmp.ne.s32.totalorder %s885_s5, %s633_s26  ;;  %s63_s23 = int_to_ptr.vmem [resolvable:$true] %s62_s23 }
  0x37   :  { %p637_p11 = scmp.lt.u32.totalorder %s633_s26, %s885_s5 }
  0x39   :  { %p639_p12 = pnand %p637_p11, %p634_p10 }
  0x3b   :  { %642 = shalt.err (!%p639_p12)
}
  0x3c   :  { %s643_s28 = scalar_lea.vmem %s63_s23, 1024  ;;  %p648_p0 = scmp.lt.s32.totalorder %s63_s23, %s63_s23 }
  0x3d   :  { %p644_p13 = scmp.ne.s32.totalorder %s63_s23, %s643_s28  ;;  %p649_p1 = scmp.lt.s32.totalorder %s643_s28, %s643_s28 }
  0x3f   :  { %p650_p2 = por %p649_p1, %p648_p0 }
  0x41   :  { %p651_p3 = pnand %p650_p2, %p644_p13 }
  0x43   :  { %654 = shalt.err (!%p651_p3)
}
  0x44   :  { %68 = dma.hbm_to_vmem [thread:$0]  %s885_s5, 1024, %s63_s23, [#allocation9], %s710_s15, %s710_s15, %s711_s16  }
  0x45   :  { %699 = dma.done.wait [#allocation3], 64  }
  0x46   :  { %700 = vsyncadd [#allocation3], 4294967232 }
  0x47   :  { %701 = dma.done.wait [#allocation6], 1536  }
  0x48   :  { %702 = vsyncadd [#allocation6], 4294965760 }
  0x49   :  { %703 = dma.done.wait [#allocation9], 1024  }
  0x4a   :  { %704 = vsyncadd [#allocation9], 4294966272  ;;  %v715_v0 = vmov 0.0   ;;  %vm716_vm0 = vmmov 0   ;;  %v543_v1 = vld [vmem:[#allocation5] sm:$0xff]   ;;  %v544_v2 = vld [vmem:[#allocation5 + $0x8] sm:$0xff]  }
  0x4b   :  { %481 = vmatprep.subr.bf16.mxu0 %v715_v0  ;;  %489 = vmatprep.mubr.msk.bf16.mxu0 %vm716_vm0, %v715_v0  ;;  %v547_v3 = vld [vmem:[#allocation7] sm:$0xff]   ;;  %v545_v4 = vld [vmem:[#allocation5 + $0x10] sm:$0xff]   ;;  %v548_v5 = vld [vmem:[#allocation7 + $0x8] sm:$0xff]   ;;  %vm125_vm1 = vcmask 523264   ;;  %s717_s11 = smov [#allocation10]  }
  0x4c   :  { %493 = vmatprep.subr.bf16.mxu1 %v715_v0  ;;  %509 = vmatprep.mubr.msk.bf16.mxu1 %vm716_vm0, %v715_v0  ;;  %v546_v6 = vld [vmem:[#allocation5 + $0x18] sm:$0xff]   ;;  %v549_v8 = vld [vmem:[#allocation7 + $0x10] sm:$0xff]   ;;  %v551_v11 = vld [vmem:[#allocation7 + $0x20] sm:$0xff]   ;;  %s409_s12 = sshll.u32 %s717_s11, 4  ;;  %s410_s12 = int_to_ptr.vmem [resolvable:$true] %s409_s12 }
  0x4d   :  { %482 = vmatpush3.bf16.msra.mxu0 %v543_v1  ;;  %494 = vmatpush3.bf16.msra.mxu1 %v547_v3  ;;  %v84_v7 = vld [vmem:[#allocation2] sm:$0xf]  ;;  %v552_v12 = vld [vmem:[#allocation7 + $0x28] sm:$0xff]   ;;  %v553_v13 = vld [vmem:[#allocation7 + $0x30] sm:$0xff]   ;;  %p660_p5 = scmp.lt.s32.totalorder %s410_s12, %s410_s12 }
  0x4e   :  { %483 = vmatprep.subr.bf16.mxu0 %v715_v0  ;;  %495 = vmatprep.subr.bf16.mxu1 %v715_v0  ;;  %v85_v9 = vpack.c.bf16 %v84_v7, %v84_v7  ;;  %v550_v10 = vld [vmem:[#allocation7 + $0x18] sm:$0xff]   ;;  %v555_v15 = vld [vmem:[#allocation8] sm:$0xff]   ;;  %v556_v16 = vld [vmem:[#allocation8 + $0x8] sm:$0xff]  }
  0x4f   :  { %v554_v14 = vld [vmem:[#allocation7 + $0x38] sm:$0xff]   ;;  %v557_v17 = vld [vmem:[#allocation8 + $0x10] sm:$0xff]   ;;  %v559_v19 = vld [vmem:[#allocation8 + $0x20] sm:$0xff]  }
  0x50   :  { %v558_v18 = vld [vmem:[#allocation8 + $0x18] sm:$0xff]   ;;  %v560_v20 = vld [vmem:[#allocation8 + $0x28] sm:$0xff]   ;;  %v561_v29 = vld [vmem:[#allocation8 + $0x30] sm:$0xff]  }
  0x51   :  { %484 = vmatpush3.bf16.msra.mxu0 %v544_v2  ;;  %496 = vmatpush3.bf16.msra.mxu1 %v548_v5  ;;  %v434_v21 = vld [vmem:[%s882_s2] ss:$0 sm:$0xff] }
  0x52   :  { %485 = vmatprep.subr.bf16.mxu0 %v715_v0  ;;  %497 = vmatprep.subr.bf16.mxu1 %v715_v0  ;;  %v562_v30 = vld [vmem:[#allocation8 + $0x38] sm:$0xff]  }
  0x53   :  { %v440_v31 = vld [vmem:[%s884_s4] ss:$0 sm:$0xff]  ;;  %s655_s4 = scalar_lea.vmem %s410_s12, 64 }
  0x54   :  { %v449_v39 = vld [vmem:[%s886_s6] ss:$0 sm:$0xff]  ;;  %p656_p4 = scmp.ne.s32.totalorder %s410_s12, %s655_s4  ;;  %p661_p6 = scmp.lt.s32.totalorder %s655_s4, %s655_s4 }
  0x55   :  { %486 = vmatpush3.bf16.msra.mxu0 %v545_v4  ;;  %498 = vmatpush3.bf16.msra.mxu1 %v549_v8 }
  0x56   :  { %487 = vmatprep.subr.bf16.mxu0 %v715_v0  ;;  %499 = vmatprep.subr.bf16.mxu1 %v715_v0  ;;  %p662_p7 = por %p661_p6, %p660_p5 }
  0x58   :  { %p663_p8 = pnand %p662_p7, %p656_p4 }
  0x59   :  { %488 = vmatpush3.bf16.msra.mxu0 %v546_v6  ;;  %500 = vmatpush3.bf16.msra.mxu1 %v550_v10 }
  0x5a   :  { %513 = vmatprep.subr.bf16.mxu0 %v715_v0  ;;  %501 = vmatprep.subr.bf16.mxu1 %v715_v0 }
  0x5c   :  { %490 = vmatmul.mubr.msk.bf16.vlgmr.msra.gmra.mrb[0].mxu0 %vm125_vm1, %v85_v9 }
  0x5d   :  { %529 = vmatprep.mubr.msk.bf16.mxu0 %vm716_vm0, %v715_v0  ;;  %502 = vmatpush3.bf16.msra.mxu1 %v551_v11 }
  0x5e   :  { %503 = vmatprep.subr.bf16.mxu1 %v715_v0  ;;  %514 = vmatpush3.bf16.msra.mxu0 %v555_v15 }
  0x5f   :  { %515 = vmatprep.subr.bf16.mxu0 %v715_v0 }
  0x61   :  { %504 = vmatpush3.bf16.msra.mxu1 %v552_v12 }
  0x62   :  { %505 = vmatprep.subr.bf16.mxu1 %v715_v0  ;;  %516 = vmatpush3.bf16.msra.mxu0 %v556_v16 }
  0x63   :  { %517 = vmatprep.subr.bf16.mxu0 %v715_v0 }
  0x65   :  { %506 = vmatpush3.bf16.msra.mxu1 %v553_v13 }
  0x66   :  { %507 = vmatprep.subr.bf16.mxu1 %v715_v0  ;;  %518 = vmatpush3.bf16.msra.mxu0 %v557_v17 }
  0x67   :  { %519 = vmatprep.subr.bf16.mxu0 %v715_v0 }
  0x69   :  { %508 = vmatpush3.bf16.msra.mxu1 %v554_v14 }
  0x6a   :  { %520 = vmatpush3.bf16.msra.mxu0 %v558_v18 }
  0x6b   :  { %521 = vmatprep.subr.bf16.mxu0 %v715_v0 }
  0x6e   :  { %522 = vmatpush3.bf16.msra.mxu0 %v559_v19 }
  0x6f   :  { %523 = vmatprep.subr.bf16.mxu0 %v715_v0 }
  0x72   :  { %524 = vmatpush3.bf16.msra.mxu0 %v560_v20 }
  0x73   :  { %525 = vmatprep.subr.bf16.mxu0 %v715_v0 }
  0x76   :  { %526 = vmatpush3.bf16.msra.mxu0 %v561_v29 }
  0x77   :  { %527 = vmatprep.subr.bf16.mxu0 %v715_v0 }
  0x7a   :  { %528 = vmatpush3.bf16.msra.mxu0 %v562_v30 }
 0x12f   :  { %v163_v22 = vpop.f32.mrb[0].mxu0 }
 0x130   :  { %v164_v23 = vadd.f32 %v434_v21, %v163_v22  ;;  %v491_v24 = vpop.f32.mrb[1].mxu0 }
 0x131   :  { %v166_v25 = vpop.f32.mrb[2].mxu0 }
 0x132   :  { %v169_v26 = vmax.f32 %v164_v23, 0.0  ;;  %v492_v27 = vpop.f32.mrb[3].mxu0 }
 0x134   :  { %v170_v28 = vpack.c.bf16 %v169_v26, %v169_v26 }
 0x136   :  { %510 = vmatmul.mubr.bf16.vlgmr.msra.gmra.mrb[0].mxu1 %v170_v28 }
 0x209   :  { %v276_v32 = vpop.f32.mrb[0].mxu1 }
 0x20a   :  { %v277_v33 = vadd.f32 %v440_v31, %v276_v32  ;;  %v511_v34 = vpop.f32.mrb[1].mxu1 }
 0x20b   :  { %v279_v35 = vpop.f32.mrb[2].mxu1 }
 0x20c   :  { %v282_v36 = vmax.f32 %v277_v33, 0.0  ;;  %v512_v37 = vpop.f32.mrb[3].mxu1 }
 0x20e   :  { %v283_v38 = vpack.c.bf16 %v282_v36, %v282_v36 }
 0x210   :  { %530 = vmatmul.mubr.bf16.vlgmr.msra.gmra.mrb[4].mxu0 %v283_v38 }
 0x2e3   :  { %v389_v40 = vpop.f32.mrb[4].mxu0 }
 0x2e4   :  { %v390_v41 = vadd.f32 %v449_v39, %v389_v40  ;;  %v531_v42 = vpop.f32.mrb[5].mxu0 }
 0x2e5   :  { %v392_v43 = vpop.f32.mrb[6].mxu0 }
 0x2e6   :  { %v396_v44 = vsub.f32 0.0, %v390_v41  ;;  %395 = vst [vmem:[#allocation10] sm:$0xf] %v390_v41  ;;  %v532_v45 = vpop.f32.mrb[7].mxu0 }
 0x2e7   :  { %666 = shalt.err (!%p663_p8)
}
 0x2e8   :  { %s667_s6 = scalar_lea.hbm %s887_s7, 64 }
 0x2e9   :  { %p668_p9 = scmp.ne.s32.totalorder %s887_s7, %s667_s6  ;;  %p671_p10 = scmp.lt.u32.totalorder %s667_s6, %s887_s7 }
 0x2eb   :  { %p673_p11 = pnand %p671_p10, %p668_p9 }
 0x2ed   :  { %676 = shalt.err (!%p673_p11)
}
 0x2ee   :  { %412 = dma.vmem_to_hbm [thread:$0]  %s410_s12, 64, %s887_s7, [#allocation4]   ;;  %v397_v46 = vmul.f32 1.442695, %v396_v44 }
 0x2ef   :  { %s718_s23 = smov [#allocation11]  }
 0x2f0   :  { %563 = vpow2.f32 %v397_v46  ;;  %s419_s24 = sshll.u32 %s718_s23, 4  ;;  %s420_s24 = int_to_ptr.vmem [resolvable:$true] %s419_s24 }
 0x2f1   :  { %s677_s25 = scalar_lea.vmem %s420_s24, 32  ;;  %p682_p13 = scmp.lt.s32.totalorder %s420_s24, %s420_s24 }
 0x2f2   :  { %p678_p12 = scmp.ne.s32.totalorder %s420_s24, %s677_s25  ;;  %p683_p0 = scmp.lt.s32.totalorder %s677_s25, %s677_s25 }
 0x2f4   :  { %p684_p1 = por %p683_p0, %p682_p13 }
 0x2f6   :  { %p685_p2 = pnand %p684_p1, %p678_p12 }
 0x2fa   :  { %v564_v47 = vpop.eup %563 }
 0x2fb   :  { %v399_v48 = vadd.f32 1.0, %v564_v47 }
 0x2fd   :  { %565 = vrcp.f32 %v399_v48 }
 0x307   :  { %v566_v49 = vpop.eup %565 }
 0x308   :  { %v401_v50 = vpack.c.bf16 %v566_v49, %v566_v49 }
 0x30a   :  { %402 = vst [vmem:[#allocation11] sm:$0x3] %v401_v50 }
 0x30b   :  { %688 = shalt.err (!%p685_p2)
}
 0x30c   :  { %s689_s27 = scalar_lea.hbm %s888_s8, 32 }
 0x30d   :  { %p690_p3 = scmp.ne.s32.totalorder %s888_s8, %s689_s27  ;;  %p693_p4 = scmp.lt.u32.totalorder %s689_s27, %s888_s8 }
 0x30f   :  { %p695_p5 = pnand %p693_p4, %p690_p3 }
 0x311   :  { %698 = shalt.err (!%p695_p5)
}
 0x312   :  { %422 = dma.vmem_to_hbm [thread:$0]  %s420_s24, 32, %s888_s8, [#allocation12]  }
 0x313   :  { %705 = dma.done.wait [#allocation4], 64  }
 0x314   :  { %706 = vsyncadd [#allocation4], 4294967232 }
 0x315   :  { %707 = dma.done.wait [#allocation12], 32  }
 0x316   :  { %708 = vsyncadd [#allocation12], 4294967264 }
 0x317   :  { %429 = vsyncpa [#allocation3], 1 }
 0x318   :  { %430 = vsyncpa [#allocation6], 1 }
 0x319   :  { %431 = vsyncpa [#allocation9], 1 }
 0x31a   :  { %432 = vsyncpa [#allocation4], 1 }
 0x31b   :  { %433 = vsyncpa [#allocation12], 1 }

</bundles_post_ra>
